<compile_context>
chip_gen: v6e
topology: v6e:2x2x1
jax: 0.10.0
libtpu: 0.0.40
codegen_flags: <defaults>
</compile_context>

<pallas_src>
import functools

import jax
import jax.numpy as jnp
from jax.experimental import pallas as pl
from jax.experimental.pallas import tpu as pltpu


# --------------------------------------------------------------------------- #
# Kernel
# --------------------------------------------------------------------------- #
def atten_input_kernel(e1_ref, e2_ref, w_ref, zf_ref, rf_ref, *,
                       z_dim, mul_in_input_dtype):
    """One grid step processes a block of `bblk` batch elements.

    e1_ref: [bblk, E1_L, E_S]
    e2_ref: [bblk, E2_L, E_S]
    w_ref:  [bblk, S_L,  E_S]
    zf_ref: [bblk, S_L * Z_DIM]   z, flattened (lane-dense)
    rf_ref: [bblk, S_L * Z_DIM]   output R, flattened (lane-dense)
    """
    f32 = jnp.float32
    s_l = w_ref.shape[1]
    sz = zf_ref.shape[1]                      # S_L * Z_DIM

    # --- attention logits (algebraic hoist: mean_k(w @ e^T) == w @ mean_k(e)) --
    w = w_ref[...].astype(f32)                                        # [b, S, E]
    e1m = jnp.mean(e1_ref[...].astype(f32), axis=1, keepdims=True)    # [b, 1, E]
    e2m = jnp.mean(e2_ref[...].astype(f32), axis=1, keepdims=True)    # [b, 1, E]
    a1 = jnp.sum(w * e1m, axis=2)                                     # [b, S]
    a2 = jnp.sum(w * e2m, axis=2)                                     # [b, S]

    # Lane-major softmax over the sentence axis (S_L sits on lanes).
    def half_softmax(a):                       # 0.5 * softmax(a, axis=-1)
        m = jnp.max(a, axis=-1, keepdims=True)
        e = jnp.exp(a - m)
        s = jnp.sum(e, axis=-1, keepdims=True)
        return e / (s + s)                     # exact divide: kernel is HBM-bound

    scale = half_softmax(a1) + half_softmax(a2)                       # [b, S]

    # --- expand scale[b, s] -> scale_flat[b, s*Z_DIM + f] ----------------------
    # One-hot MXU matmul keeps the big multiply/store lane-dense without any
    # sublane<->lane reshape inside the kernel.  expand[s, l] = 1 iff
    # l // Z_DIM == s (built with iota + compares only; no integer division).
    # Note: for very large S_L*Z_DIM this one-hot matrix should be tiled over
    # an inner loop; at typical sentence/embedding sizes it is small.
    rows = jax.lax.broadcasted_iota(jnp.int32, (s_l, sz), 0)
    cols = jax.lax.broadcasted_iota(jnp.int32, (s_l, sz), 1)
    lo = rows * z_dim
    expand = ((cols >= lo) & (cols < lo + z_dim)).astype(f32)         # [S, S*Z]
    scale_flat = jnp.dot(scale, expand,
                         preferred_element_type=f32,
                         precision=jax.lax.Precision.HIGHEST)         # [b, S*Z]

    zf = zf_ref[...]
    if mul_in_input_dtype:
        # bf16 inputs on v6e/v7x: keep the largest multiply in bf16.
        rf_ref[...] = (zf * scale_flat.astype(zf.dtype)).astype(rf_ref.dtype)
    else:
        rf_ref[...] = (zf.astype(f32) * scale_flat).astype(rf_ref.dtype)


# --------------------------------------------------------------------------- #
# Chip-aware block sizing
# --------------------------------------------------------------------------- #
def _tpu_generation():
    """Best-effort TPU generation (5, 6, 7, ...) or None if unknown."""
    try:
        info = pltpu.get_tpu_info()
        name = str(getattr(info, "chip_version", "")) + str(getattr(info, "name", ""))
        for g in (7, 6, 5, 4):
            if str(g) in name:
                return g
    except Exception:
        pass
    try:
        kind = jax.devices()[0].device_kind.lower()
    except Exception:
        return None
    for g in (7, 6, 5, 4, 3, 2):
        if f"v{g}" in kind or f"tpu{g}" in kind or f"tpu {g}" in kind:
            return g
    return None


def _chip_config(gen, B):
    """Return (vmem_limit_bytes, block_data_budget_bytes, min_grid_steps)."""
    if gen is not None and gen >= 7:
        # v7x: 64 MiB VMEM per TensorCore, 2 TCs/chip -> >=2 parallel grid steps.
        return 48 << 20, 36 << 20, (2 if B >= 2 else 1)
    if gen == 6:
        # v6e: single TC, 128 MiB VMEM -> one big step, generous budget.
        return 96 << 20, 72 << 20, 1
    if gen is not None and gen <= 5:
        # v5e: single TC, 128 MiB VMEM.
        return 64 << 20, 48 << 20, 1
    # Unknown backend: stay inside the default 32 MiB scoped VMEM.
    return 32 << 20, 20 << 20, 1


def _padded_bytes(shape, dtype):
    """VMEM footprint: last dim padded to 128 lanes, second-to-last padded to
    the dtype's sublane multiple (8 for 32-bit, 16 for 16-bit, ...)."""
    dt = jnp.dtype(dtype)
    sub = 8 * max(1, 4 // dt.itemsize)
    dims = (1,) * max(0, 2 - len(shape)) + tuple(shape)
    *major, s, l = dims
    n = 1
    for d in major:
        n *= d
    n *= -(-s // sub) * sub
    n *= -(-l // 128) * 128
    return n * dt.itemsize


def _choose_bblk(B, *, budget, min_steps, est_fn):
    # Candidates are multiples of 8 (keeps the flat (bblk, S_L*Z_DIM) block's
    # sublane dim aligned) or the full batch B (full-extent dim is also legal).
    cands = {B}
    cands.update(range(8, B, 8))
    cands = sorted(cands, reverse=True)
    cap = -(-B // min_steps)                      # largest bblk giving >= min_steps
    choices = [c for c in cands if c <= cap] or [cands[-1]]
    for c in choices:                             # descending: biggest block first
        if est_fn(c) <= budget:
            return c
    return choices[-1]


# --------------------------------------------------------------------------- #
# Wrapper
# --------------------------------------------------------------------------- #
def atten_input(entity1, entity2, word, z, *, bblk=None):
    """R = z * (softmax(mean_k(word@e1^T)) + softmax(mean_k(word@e2^T))) / 2.

    If given, `bblk` should be a multiple of 8 or equal to the batch size
    (the flat z/R blocks put the batch dim on sublanes).
    """
    B, S_L, E_S = word.shape
    E1_L = entity1.shape[1]
    E2_L = entity2.shape[1]
    Z_DIM = z.shape[2]
    SZ = S_L * Z_DIM

    gen = _tpu_generation()
    vmem_limit, budget, min_steps = _chip_config(gen, B)

    # bf16 inputs keep the big multiply in bf16 on chips with bf16 VALUs.
    mul_in_input_dtype = (jnp.dtype(z.dtype) == jnp.bfloat16) and (gen is None or gen >= 6)
    cdt = z.dtype if mul_in_input_dtype else jnp.float32

    def vmem_estimate(blk):
        pb = _padded_bytes
        # BlockSpec-managed I/O blocks are double-buffered by the pipeline.
        io = 2 * (pb((blk, E1_L, E_S), entity1.dtype)
                  + pb((blk, E2_L, E_S), entity2.dtype)
                  + pb((blk, S_L, E_S), word.dtype)
                  + 2 * pb((blk, SZ), z.dtype))          # z in + R out
        # In-kernel temporaries (f32 upcasts, one-hot expansion, products).
        tmp = (2 * pb((blk, S_L, E_S), jnp.float32)      # w upcast + w*e_mean product
               + pb((blk, SZ), jnp.float32)              # scale_flat
               + 3 * pb((S_L, SZ), jnp.float32)          # iotas + one-hot matrix
               + pb((blk, SZ), cdt)                      # product before store cast
               + (pb((blk, SZ), jnp.float32)
                  if (jnp.dtype(cdt) == jnp.float32 and jnp.dtype(z.dtype) != jnp.float32)
                  else 0))
        return io + tmp + (1 << 18)                      # small-tensor fudge

    if bblk is None:
        bblk = _choose_bblk(B, budget=budget, min_steps=min_steps,
                            est_fn=vmem_estimate)
    bblk = max(1, min(int(bblk), B))
    grid = (pl.cdiv(B, bblk),)

    # Free (row-major) reshape: present z / R as [B, S_L*Z_DIM] so the largest
    # loads and the output store are lane-dense instead of masked 40-lane ops.
    z_flat = z.reshape(B, SZ)

    kernel = functools.partial(atten_input_kernel, z_dim=Z_DIM,
                               mul_in_input_dtype=mul_in_input_dtype)

    out_flat = pl.pallas_call(
        kernel,
        out_shape=jax.ShapeDtypeStruct((B, SZ), z.dtype),
        grid_spec=pltpu.PrefetchScalarGridSpec(
            num_scalar_prefetch=0,
            grid=grid,
            in_specs=[
                pl.BlockSpec((bblk, E1_L, E_S), lambda b: (b, 0, 0)),
                pl.BlockSpec((bblk, E2_L, E_S), lambda b: (b, 0, 0)),
                pl.BlockSpec((bblk, S_L, E_S), lambda b: (b, 0, 0)),
                pl.BlockSpec((bblk, SZ), lambda b: (b, 0)),
            ],
            out_specs=pl.BlockSpec((bblk, SZ), lambda b: (b, 0)),
        ),
        compiler_params=pltpu.CompilerParams(
            dimension_semantics=("parallel",),
            vmem_limit_bytes=int(vmem_limit),
        ),
    )(entity1, entity2, word, z_flat)

    return out_flat.reshape(B, S_L, Z_DIM)


# --------------------------------------------------------------------------- #
# Pure-JAX reference (mirrors the PyTorch forward)
# --------------------------------------------------------------------------- #
def atten_input_ref(entity1, entity2, word, z):
    A1 = jnp.einsum("bse,bke->bsk", word, entity1).mean(axis=2)   # [B, S_L]
    A2 = jnp.einsum("bse,bke->bsk", word, entity2).mean(axis=2)
    alpha1 = jax.nn.softmax(A1, axis=1)[:, :, None]
    alpha2 = jax.nn.softmax(A2, axis=1)[:, :, None]
    return z * (alpha1 + alpha2) / 2


if __name__ == "__main__":
    key = jax.random.PRNGKey(0)
    k1, k2, k3, k4 = jax.random.split(key, 4)

    B, S_L, E_S, PE_S = 8, 8, 32, 4
    E1_L, E2_L = 3, 5
    Z_DIM = E_S + 2 * PE_S

    entity1 = jax.random.normal(k1, (B, E1_L, E_S), dtype=jnp.float32)
    entity2 = jax.random.normal(k2, (B, E2_L, E_S), dtype=jnp.float32)
    word = jax.random.normal(k3, (B, S_L, E_S), dtype=jnp.float32)
    z = jax.random.normal(k4, (B, S_L, Z_DIM), dtype=jnp.float32)

    out = jax.block_until_ready(atten_input(entity1, entity2, word, z))
    ref = atten_input_ref(entity1, entity2, word, z)
    assert out.shape == (B, S_L, Z_DIM)
    assert jnp.allclose(out, ref, atol=1e-4, rtol=1e-4), "mismatch vs JAX reference"

    # Ragged-grid check (B not a multiple of bblk): the last block's OOB rows are
    # read as garbage but are per-batch-element only and never written back.
    B2 = 12
    kk = jax.random.split(jax.random.PRNGKey(1), 4)
    e1b = jax.random.normal(kk[0], (B2, E1_L, E_S), dtype=jnp.float32)
    e2b = jax.random.normal(kk[1], (B2, E2_L, E_S), dtype=jnp.float32)
    wb = jax.random.normal(kk[2], (B2, S_L, E_S), dtype=jnp.float32)
    zb = jax.random.normal(kk[3], (B2, S_L, Z_DIM), dtype=jnp.float32)
    outb = jax.block_until_ready(atten_input(e1b, e2b, wb, zb, bblk=8))
    refb = atten_input_ref(e1b, e2b, wb, zb)
    assert jnp.allclose(outb, refb, atol=1e-4, rtol=1e-4), "ragged-grid mismatch"

    print("KERNEL_OK")
</pallas_src>

<mosaic_0001>
module attributes {stable_mosaic.version = 11 : i64} {
  func.func @atten_input_kernel(%arg0: i32, %arg1: memref<8x3x32xf32, #tpu.memory_space<vmem>>, %arg2: memref<8x5x32xf32, #tpu.memory_space<vmem>>, %arg3: memref<8x8x32xf32, #tpu.memory_space<vmem>>, %arg4: memref<8x320xf32, #tpu.memory_space<vmem>>, %arg5: memref<8x320xf32, #tpu.memory_space<vmem>>) attributes {dimension_semantics = [#tpu.dimension_semantics<parallel>], iteration_bounds = array<i64: 1>, scalar_prefetch = 0 : i64, scratch_operands = 0 : i64, tpu.core_type = #tpu.core_type<tc>, window_params = [{transform_indices = @transform_0, window_bounds = array<i64: 8, 3, 32>}, {transform_indices = @transform_1, window_bounds = array<i64: 8, 5, 32>}, {transform_indices = @transform_2, window_bounds = array<i64: 8, 8, 32>}, {transform_indices = @transform_3, window_bounds = array<i64: 8, 320>}, {transform_indices = @transform_4, window_bounds = array<i64: 8, 320>}]} {
    %c0 = arith.constant 0 : index
    %c0_0 = arith.constant 0 : index
    %c0_1 = arith.constant 0 : index
    %0 = vector.load %arg3[%c0, %c0_0, %c0_1] : memref<8x8x32xf32, #tpu.memory_space<vmem>>, vector<8x8x32xf32>
    %c0_2 = arith.constant 0 : index
    %c0_3 = arith.constant 0 : index
    %c0_4 = arith.constant 0 : index
    %1 = vector.load %arg1[%c0_2, %c0_3, %c0_4] : memref<8x3x32xf32, #tpu.memory_space<vmem>>, vector<8x3x32xf32>
    %cst = arith.constant dense<0.000000e+00> : vector<8x32xf32>
    %2 = vector.multi_reduction <add>, %1, %cst [1] : vector<8x3x32xf32> to vector<8x32xf32>
    %3 = vector.shape_cast %2 : vector<8x32xf32> to vector<8x1x32xf32>
    %cst_5 = arith.constant 3.000000e+00 : f32
    %4 = vector.broadcast %cst_5 : f32 to vector<8x1x32xf32>
    %5 = arith.divf %3, %4 : vector<8x1x32xf32>
    %c0_6 = arith.constant 0 : index
    %c0_7 = arith.constant 0 : index
    %c0_8 = arith.constant 0 : index
    %6 = vector.load %arg2[%c0_6, %c0_7, %c0_8] : memref<8x5x32xf32, #tpu.memory_space<vmem>>, vector<8x5x32xf32>
    %cst_9 = arith.constant dense<0.000000e+00> : vector<8x32xf32>
    %7 = vector.multi_reduction <add>, %6, %cst_9 [1] : vector<8x5x32xf32> to vector<8x32xf32>
    %8 = vector.shape_cast %7 : vector<8x32xf32> to vector<8x1x32xf32>
    %cst_10 = arith.constant 5.000000e+00 : f32
    %9 = vector.broadcast %cst_10 : f32 to vector<8x1x32xf32>
    %10 = arith.divf %8, %9 : vector<8x1x32xf32>
    %11 = vector.broadcast %5 : vector<8x1x32xf32> to vector<8x8x32xf32>
    %12 = arith.mulf %0, %11 : vector<8x8x32xf32>
    %cst_11 = arith.constant dense<0.000000e+00> : vector<8x8xf32>
    %13 = vector.multi_reduction <add>, %12, %cst_11 [2] : vector<8x8x32xf32> to vector<8x8xf32>
    %14 = vector.broadcast %10 : vector<8x1x32xf32> to vector<8x8x32xf32>
    %15 = arith.mulf %0, %14 : vector<8x8x32xf32>
    %cst_12 = arith.constant dense<0.000000e+00> : vector<8x8xf32>
    %16 = vector.multi_reduction <add>, %15, %cst_12 [2] : vector<8x8x32xf32> to vector<8x8xf32>
    %cst_13 = arith.constant dense<0xFF800000> : vector<8xf32>
    %17 = vector.multi_reduction <maximumf>, %13, %cst_13 [1] : vector<8x8xf32> to vector<8xf32>
    %18 = vector.shape_cast %17 : vector<8xf32> to vector<8x1xf32>
    %19 = vector.broadcast %18 : vector<8x1xf32> to vector<8x8xf32>
    %20 = arith.subf %13, %19 : vector<8x8xf32>
    %21 = math.exp %20 : vector<8x8xf32>
    %cst_14 = arith.constant dense<0.000000e+00> : vector<8xf32>
    %22 = vector.multi_reduction <add>, %21, %cst_14 [1] : vector<8x8xf32> to vector<8xf32>
    %23 = vector.shape_cast %22 : vector<8xf32> to vector<8x1xf32>
    %24 = arith.addf %23, %23 : vector<8x1xf32>
    %25 = vector.broadcast %24 : vector<8x1xf32> to vector<8x8xf32>
    %26 = arith.divf %21, %25 : vector<8x8xf32>
    %cst_15 = arith.constant dense<0xFF800000> : vector<8xf32>
    %27 = vector.multi_reduction <maximumf>, %16, %cst_15 [1] : vector<8x8xf32> to vector<8xf32>
    %28 = vector.shape_cast %27 : vector<8xf32> to vector<8x1xf32>
    %29 = vector.broadcast %28 : vector<8x1xf32> to vector<8x8xf32>
    %30 = arith.subf %16, %29 : vector<8x8xf32>
    %31 = math.exp %30 : vector<8x8xf32>
    %cst_16 = arith.constant dense<0.000000e+00> : vector<8xf32>
    %32 = vector.multi_reduction <add>, %31, %cst_16 [1] : vector<8x8xf32> to vector<8xf32>
    %33 = vector.shape_cast %32 : vector<8xf32> to vector<8x1xf32>
    %34 = arith.addf %33, %33 : vector<8x1xf32>
    %35 = vector.broadcast %34 : vector<8x1xf32> to vector<8x8xf32>
    %36 = arith.divf %31, %35 : vector<8x8xf32>
    %37 = arith.addf %26, %36 : vector<8x8xf32>
    %38 = tpu.iota {dimensions = array<i32: 0>} : vector<8x320xi32>
    %39 = tpu.iota {dimensions = array<i32: 1>} : vector<8x320xi32>
    %c40_i32 = arith.constant 40 : i32
    %40 = vector.broadcast %c40_i32 : i32 to vector<8x320xi32>
    %41 = arith.muli %38, %40 : vector<8x320xi32>
    %42 = arith.cmpi sge, %39, %41 : vector<8x320xi32>
    %c40_i32_17 = arith.constant 40 : i32
    %43 = vector.broadcast %c40_i32_17 : i32 to vector<8x320xi32>
    %44 = arith.addi %41, %43 : vector<8x320xi32>
    %45 = arith.cmpi slt, %39, %44 : vector<8x320xi32>
    %46 = arith.andi %42, %45 : vector<8x320xi1>
    %47 = arith.extui %46 : vector<8x320xi1> to vector<8x320xi32>
    %48 = arith.sitofp %47 : vector<8x320xi32> to vector<8x320xf32>
    %cst_18 = arith.constant dense<0.000000e+00> : vector<8x320xf32>
    %49 = tpu.matmul %37, %48, %cst_18 {dimension_numbers = #tpu.dot_dimension_numbers<[1], [0], [0], [1], [0, 0, 1, 1], [], []>, precision = #tpu.contract_precision<fp32>} : vector<8x8xf32>, vector<8x320xf32>, vector<8x320xf32> -> vector<8x320xf32>
    %c0_19 = arith.constant 0 : index
    %c0_20 = arith.constant 0 : index
    %50 = vector.load %arg4[%c0_19, %c0_20] : memref<8x320xf32, #tpu.memory_space<vmem>>, vector<8x320xf32>
    %51 = arith.mulf %50, %49 : vector<8x320xf32>
    %c0_21 = arith.constant 0 : index
    %c0_22 = arith.constant 0 : index
    %52 = vector.load %arg5[%c0_21, %c0_22] : memref<8x320xf32, #tpu.memory_space<vmem>>, vector<8x320xf32>
    tpu.vector_store %arg5[%c0_21, %c0_22], %51 {strides = array<i32>} : memref<8x320xf32, #tpu.memory_space<vmem>>, vector<8x320xf32>,
    return
  }
  func.func @transform_0(%arg0: i32) -> (i32, i32, i32) {
    %c0_i32 = arith.constant 0 : i32
    %c0_i32_0 = arith.constant 0 : i32
    %c0_i32_1 = arith.constant 0 : i32
    return %arg0, %c0_i32, %c0_i32_0 : i32, i32, i32
  }
  func.func @transform_1(%arg0: i32) -> (i32, i32, i32) {
    %c0_i32 = arith.constant 0 : i32
    %c0_i32_0 = arith.constant 0 : i32
    %c0_i32_1 = arith.constant 0 : i32
    return %arg0, %c0_i32, %c0_i32_0 : i32, i32, i32
  }
  func.func @transform_2(%arg0: i32) -> (i32, i32, i32) {
    %c0_i32 = arith.constant 0 : i32
    %c0_i32_0 = arith.constant 0 : i32
    %c0_i32_1 = arith.constant 0 : i32
    return %arg0, %c0_i32, %c0_i32_0 : i32, i32, i32
  }
  func.func @transform_3(%arg0: i32) -> (i32, i32) {
    %c0_i32 = arith.constant 0 : i32
    %c0_i32_0 = arith.constant 0 : i32
    return %arg0, %c0_i32 : i32, i32
  }
  func.func @transform_4(%arg0: i32) -> (i32, i32) {
    %c0_i32 = arith.constant 0 : i32
    %c0_i32_0 = arith.constant 0 : i32
    return %arg0, %c0_i32 : i32, i32
  }
}

</mosaic_0001>

<bundles_post_ra>
// kernel: tpu_custom_call.1
= control target key start
LH: loop header
LB: loop body
LE: loop exit
PB: predicated region body
PF: predicated region fallthrough
CT: control target
= control target key end

     0   :  { %vm108_vm0 = vcmask 258048   ;;  %vm34_vm1 = vcmask 256000   ;;  %vm182_vm2 = vcmask 261120   ;;  %s2446_s0 = inlined_call_operand.vmem [shape: f32[8,3,32], index: 0, kind: input, shape index: {}]   ;;  %s2447_s1 = inlined_call_operand.vmem [shape: f32[8,5,32], index: 1, kind: input, shape index: {}]   ;;  %s2448_s2 = inlined_call_operand.vmem [shape: f32[8,8,32], index: 2, kind: input, shape index: {}]   ;;  %s2449_s3 = inlined_call_operand.vmem [shape: f32[8,320], index: 3, kind: input, shape index: {}]   ;;  %s2450_s4 = inlined_call_operand.hbm [shape: f32[8,320], index: 4, kind: output, shape index: {}]  }
   0x1   :  { %v100_v0 = vld [vmem:[%s2447_s1] sm:$0x1f]  ;;  %v101_v3 = vld [vmem:[%s2447_s1 + $0x8] sm:$0x1f]  ;;  %v102_v11 = vld [vmem:[%s2447_s1 + $0x10] sm:$0x1f] }
   0x2   :  { %v109_v1 = vsel %vm108_vm0, %v100_v0, 0.0  ;;  %v26_v2 = vld [vmem:[%s2446_s0] sm:$0x7]  ;;  %v116_v6 = vsel %vm108_vm0, %v101_v3, 0.0  ;;  %v27_v7 = vld [vmem:[%s2446_s0 + $0x4] sm:$0x7] }
   0x3   :  { %v110_v4 = vrot.slane %v109_v1, 4  ;;  %v35_v5 = vsel %vm34_vm1, %v26_v2, 0.0  ;;  %v117_v9 = vrot.slane %v116_v6, 4  ;;  %v42_v10 = vsel %vm34_vm1, %v27_v7, 0.0  ;;  %v28_v15 = vld [vmem:[%s2446_s0 + $0x8] sm:$0x7] }
   0x4   :  { %v36_v8 = vrot.slane %v35_v5, 4  ;;  %v43_v13 = vrot.slane %v42_v10, 4  ;;  %v123_v14 = vsel %vm108_vm0, %v102_v11, 0.0  ;;  %v103_v16 = vld [vmem:[%s2447_s1 + $0x18] sm:$0x1f]  ;;  %v49_v20 = vsel %vm34_vm1, %v28_v15, 0.0 }
   0x5   :  { %v111_v12 = vadd.f32 %v110_v4, %v109_v1  ;;  %v118_v18 = vadd.f32 %v117_v9, %v116_v6  ;;  %v124_v19 = vrot.slane %v123_v14, 4  ;;  %v29_v21 = vld [vmem:[%s2446_s0 + $0xc] sm:$0x7]  ;;  %v50_v24 = vrot.slane %v49_v20, 4 }
   0x6   :  { %v37_v17 = vadd.f32 %v36_v8, %v35_v5  ;;  %v44_v23 = vadd.f32 %v43_v13, %v42_v10  ;;  %v130_v25 = vsel %vm108_vm0, %v103_v16, 0.0  ;;  %v56_v33 = vsel %vm34_vm1, %v29_v21, 0.0 }
   0x7   :  { %v112_v22 = vrot.slane %v111_v12, 2  ;;  %v119_v27 = vrot.slane %v118_v18, 2  ;;  %v125_v28 = vadd.f32 %v124_v19, %v123_v14  ;;  %v131_v29 = vrot.slane %v130_v25, 4 }
   0x8   :  { %v38_v26 = vrot.slane %v37_v17, 2  ;;  %v45_v31 = vrot.slane %v44_v23, 2  ;;  %v51_v32 = vadd.f32 %v50_v24, %v49_v20  ;;  %v57_v41 = vrot.slane %v56_v33, 4 }
   0x9   :  { %v113_v30 = vadd.f32 %v112_v22, %v111_v12  ;;  %v120_v35 = vadd.f32 %v119_v27, %v118_v18  ;;  %v126_v36 = vrot.slane %v125_v28, 2  ;;  %v132_v37 = vadd.f32 %v131_v29, %v130_v25 }
   0xa   :  { %v39_v34 = vadd.f32 %v38_v26, %v37_v17  ;;  %v46_v39 = vadd.f32 %v45_v31, %v44_v23  ;;  %v52_v40 = vrot.slane %v51_v32, 2  ;;  %v58_v49 = vadd.f32 %v57_v41, %v56_v33 }
   0xb   :  { %v114_v38 = vrot.slane %v113_v30, 1  ;;  %v121_v43 = vrot.slane %v120_v35, 1  ;;  %v127_v44 = vadd.f32 %v126_v36, %v125_v28  ;;  %v133_v45 = vrot.slane %v132_v37, 2 }
   0xc   :  { %v40_v42 = vrot.slane %v39_v34, 1  ;;  %v47_v47 = vrot.slane %v46_v39, 1  ;;  %v53_v48 = vadd.f32 %v52_v40, %v51_v32 }
   0xd   :  { %v115_v46 = vadd.f32 %v114_v38, %v113_v30 }
   0xe   :  { %9 = vsyncpa [#allocation3], 0  ;;  %v18_v50 = vld [vmem:[%s2448_s2] sm:$0xff]  ;;  %v41_v51 = vadd.f32 %v40_v42, %v39_v34  ;;  %v122_v52 = vadd.f32 %v121_v43, %v120_v35  ;;  %v128_v53 = vrot.slane %v127_v44, 1  ;;  %v134_v54 = vadd.f32 %v133_v45, %v132_v37  ;;  %v19_v56 = vld [vmem:[%s2448_s2 + $0x8] sm:$0xff]  ;;  %s1935_s14 = smov [#allocation2]  }
   0xf   :  { %v166_v55 = vmul.f32 0.2, %v115_v46  ;;  %v48_v57 = vadd.f32 %v47_v47, %v46_v39  ;;  %v54_v58 = vrot.slane %v53_v48, 1  ;;  %v59_v59 = vrot.slane %v58_v49, 2  ;;  %v20_v2 = vld [vmem:[%s2448_s2 + $0x10] sm:$0xff]  ;;  %v21_v8 = vld [vmem:[%s2448_s2 + $0x18] sm:$0xff] }
  0x10   :  { %v92_v60 = vmul.f32 0.33333334, %v41_v51  ;;  %v167_v61 = vmul.f32 0.2, %v122_v52  ;;  %v129_v62 = vadd.f32 %v128_v53, %v127_v44  ;;  %v135_v63 = vrot.slane %v134_v54, 1  ;;  %s1776_s15 = sshll.u32 %s1935_s14, 4  ;;  %s1777_s15 = int_to_ptr.vmem [resolvable:$true] %s1776_s15 }
  0x11   :  { %v207_v0 = vmul.f32 %v166_v55, %v18_v50  ;;  %v93_v1 = vmul.f32 0.33333334, %v48_v57  ;;  %v55_v3 = vadd.f32 %v54_v58, %v53_v48  ;;  %v60_v4 = vadd.f32 %v59_v59, %v58_v49  ;;  %v104_v10 = vld [vmem:[%s2447_s1 + $0x20] sm:$0x1f]  ;;  %v30_v15 = vld [vmem:[%s2446_s0 + $0x10] sm:$0x7]  ;;  %p1914_p1 = scmp.lt.s32.totalorder %s1777_s15, %s1777_s15 }
  0x12   :  { %v174_v5 = vmul.f32 %v92_v60, %v18_v50  ;;  %v208_v6 = vmul.f32 %v167_v61, %v19_v56  ;;  %v168_v7 = vmul.f32 0.2, %v129_v62  ;;  %v136_v9 = vadd.f32 %v135_v63, %v134_v54  ;;  %v105_v20 = vld [vmem:[%s2447_s1 + $0x28] sm:$0x1f]  ;;  %v31_v25 = vld [vmem:[%s2446_s0 + $0x14] sm:$0x7] }
  0x13   :  { %v215_v11 = vsel %vm182_vm2, %v207_v0, 0.0  ;;  %v175_v12 = vmul.f32 %v93_v1, %v19_v56  ;;  %v94_v13 = vmul.f32 0.33333334, %v55_v3  ;;  %v61_v14 = vrot.slane %v60_v4, 1  ;;  %v106_v26 = vld [vmem:[%s2447_s1 + $0x30] sm:$0x1f] }
  0x14   :  { %216 = vadd.xlane.f32.xlu1 %v215_v11  ;;  %v183_v16 = vsel %vm182_vm2, %v174_v5, 0.0  ;;  %v218_v17 = vsel %vm182_vm2, %v208_v6, 0.0  ;;  %v209_v18 = vmul.f32 %v168_v7, %v20_v2  ;;  %v169_v19 = vmul.f32 0.2, %v136_v9  ;;  %v32_v31 = vld [vmem:[%s2446_s0 + $0x18] sm:$0x7] }
  0x15   :  { %184 = vadd.xlane.f32.xlu0 %v183_v16  ;;  %v186_v21 = vsel %vm182_vm2, %v175_v12, 0.0  ;;  %v176_v22 = vmul.f32 %v94_v13, %v20_v2  ;;  %v62_v23 = vadd.f32 %v61_v14, %v60_v4  ;;  %v137_v24 = vsel %vm108_vm0, %v104_v10, 0.0  ;;  %v107_v44 = vld [vmem:[%s2447_s1 + $0x38] sm:$0x1f]  ;;  %v22_v10 = vld [vmem:[%s2448_s2 + $0x20] sm:$0xff]  ;;  %s1909_s16 = scalar_lea.vmem %s1777_s15, 384 }
  0x16   :  { %v221_v27 = vsel %vm182_vm2, %v209_v18, 0.0  ;;  %v210_v28 = vmul.f32 %v169_v19, %v21_v8  ;;  %v138_v29 = vrot.slane %v137_v24, 4  ;;  %v63_v30 = vsel %vm34_vm1, %v30_v15, 0.0  ;;  %v33_v53 = vld [vmem:[%s2446_s0 + $0x1c] sm:$0x7]  ;;  %p1910_p0 = scmp.ne.s32.totalorder %s1777_s15, %s1909_s16  ;;  %p1915_p2 = scmp.lt.s32.totalorder %s1909_s16, %s1909_s16 }
  0x17   :  { %v189_v32 = vsel %vm182_vm2, %v176_v22, 0.0  ;;  %v95_v33 = vmul.f32 0.33333334, %v62_v23  ;;  %v64_v34 = vrot.slane %v63_v30, 4  ;;  %v144_v35 = vsel %vm108_vm0, %v105_v20, 0.0  ;;  %v23_v20 = vld [vmem:[%s2448_s2 + $0x28] sm:$0xff] }
  0x18   :  { %219 = vadd.xlane.f32.xlu1 %v218_v17  ;;  %v224_v36 = vsel %vm182_vm2, %v210_v28, 0.0  ;;  %v139_v37 = vadd.f32 %v138_v29, %v137_v24  ;;  %v145_v38 = vrot.slane %v144_v35, 4  ;;  %v70_v39 = vsel %vm34_vm1, %v31_v25, 0.0  ;;  %p1916_p3 = por %p1915_p2, %p1914_p1 }
  0x19   :  { %187 = vadd.xlane.f32.xlu0 %v186_v21  ;;  %v177_v40 = vmul.f32 %v95_v33, %v21_v8  ;;  %v65_v41 = vadd.f32 %v64_v34, %v63_v30  ;;  %v71_v42 = vrot.slane %v70_v39, 4  ;;  %v151_v43 = vsel %vm108_vm0, %v106_v26, 0.0  ;;  %v24_v30 = vld [vmem:[%s2448_s2 + $0x30] sm:$0xff] }
  0x1a   :  { %v140_v45 = vrot.slane %v139_v37, 2  ;;  %v146_v46 = vadd.f32 %v145_v38, %v144_v35  ;;  %v152_v47 = vrot.slane %v151_v43, 4  ;;  %v77_v48 = vsel %vm34_vm1, %v32_v31, 0.0  ;;  %p1917_p4 = pnand %p1916_p3, %p1910_p0 }
  0x1b   :  { %v192_v49 = vsel %vm182_vm2, %v177_v40, 0.0  ;;  %v66_v50 = vrot.slane %v65_v41, 2  ;;  %v72_v51 = vadd.f32 %v71_v42, %v70_v39  ;;  %v78_v52 = vrot.slane %v77_v48, 4 }
  0x1c   :  { %222 = vadd.xlane.f32.xlu1 %v221_v27  ;;  %v141_v54 = vadd.f32 %v140_v45, %v139_v37  ;;  %v147_v55 = vrot.slane %v146_v46, 2  ;;  %v153_v56 = vadd.f32 %v152_v47, %v151_v43  ;;  %v158_v57 = vsel %vm108_vm0, %v107_v44, 0.0 }
  0x1d   :  { %190 = vadd.xlane.f32.xlu0 %v189_v32  ;;  %v67_v58 = vadd.f32 %v66_v50, %v65_v41  ;;  %v73_v59 = vrot.slane %v72_v51, 2  ;;  %v79_v60 = vadd.f32 %v78_v52, %v77_v48  ;;  %v159_v61 = vrot.slane %v158_v57, 4 }
  0x1e   :  { %v142_v62 = vrot.slane %v141_v54, 1  ;;  %v148_v63 = vadd.f32 %v147_v55, %v146_v46  ;;  %v154_v0 = vrot.slane %v153_v56, 2  ;;  %v84_v1 = vsel %vm34_vm1, %v33_v53, 0.0  ;;  %v25_v46 = vld [vmem:[%s2448_s2 + $0x38] sm:$0xff] }
  0x1f   :  { %v68_v2 = vrot.slane %v67_v58, 1  ;;  %v74_v3 = vadd.f32 %v73_v59, %v72_v51  ;;  %v80_v4 = vrot.slane %v79_v60, 2  ;;  %v160_v5 = vadd.f32 %v159_v61, %v158_v57 }
  0x20   :  { %225 = vadd.xlane.f32.xlu1 %v224_v36  ;;  %v143_v6 = vadd.f32 %v142_v62, %v141_v54  ;;  %v149_v7 = vrot.slane %v148_v63, 1  ;;  %v155_v8 = vadd.f32 %v154_v0, %v153_v56  ;;  %v85_v9 = vrot.slane %v84_v1, 4 }
  0x21   :  { %193 = vadd.xlane.f32.xlu0 %v192_v49  ;;  %v69_v11 = vadd.f32 %v68_v2, %v67_v58  ;;  %v75_v12 = vrot.slane %v74_v3, 1  ;;  %v81_v13 = vadd.f32 %v80_v4, %v79_v60  ;;  %v161_v14 = vrot.slane %v160_v5, 2 }
  0x22   :  { %v170_v15 = vmul.f32 0.2, %v143_v6  ;;  %v150_v16 = vadd.f32 %v149_v7, %v148_v63  ;;  %v156_v17 = vrot.slane %v155_v8, 1  ;;  %v86_v18 = vadd.f32 %v85_v9, %v84_v1 }
  0x23   :  { %v96_v19 = vmul.f32 0.33333334, %v69_v11  ;;  %v76_v21 = vadd.f32 %v75_v12, %v74_v3  ;;  %v82_v22 = vrot.slane %v81_v13, 1  ;;  %v162_v23 = vadd.f32 %v161_v14, %v160_v5 }
  0x24   :  { %v211_v24 = vmul.f32 %v170_v15, %v22_v10  ;;  %v171_v25 = vmul.f32 0.2, %v150_v16  ;;  %v157_v26 = vadd.f32 %v156_v17, %v155_v8  ;;  %v87_v27 = vrot.slane %v86_v18, 2 }
  0x25   :  { %v178_v28 = vmul.f32 %v96_v19, %v22_v10  ;;  %v97_v29 = vmul.f32 0.33333334, %v76_v21  ;;  %v83_v31 = vadd.f32 %v82_v22, %v81_v13  ;;  %v163_v32 = vrot.slane %v162_v23, 1 }
  0x26   :  { %v227_v33 = vsel %vm182_vm2, %v211_v24, 0.0  ;;  %v212_v34 = vmul.f32 %v171_v25, %v23_v20  ;;  %v172_v35 = vmul.f32 0.2, %v157_v26  ;;  %v88_v36 = vadd.f32 %v87_v27, %v86_v18 }
  0x27   :  { %228 = vadd.xlane.f32.xlu1 %v227_v33  ;;  %v195_v37 = vsel %vm182_vm2, %v178_v28, 0.0  ;;  %v179_v38 = vmul.f32 %v97_v29, %v23_v20  ;;  %v98_v39 = vmul.f32 0.33333334, %v83_v31  ;;  %v164_v40 = vadd.f32 %v163_v32, %v162_v23 }
  0x28   :  { %196 = vadd.xlane.f32.xlu0 %v195_v37  ;;  %v230_v41 = vsel %vm182_vm2, %v212_v34, 0.0  ;;  %v213_v42 = vmul.f32 %v172_v35, %v24_v30  ;;  %v89_v43 = vrot.slane %v88_v36, 1  ;;  %v247_v63 = vlaneseq }
  0x29   :  { %v198_v44 = vsel %vm182_vm2, %v179_v38, 0.0  ;;  %v180_v45 = vmul.f32 %v98_v39, %v24_v30  ;;  %v173_v47 = vmul.f32 0.2, %v164_v40  ;;  %vm281_vm3 = vcmask 1041409  }
  0x2a   :  { %v90_v48 = vadd.f32 %v89_v43, %v88_v36  ;;  %v233_v49 = vsel %vm182_vm2, %v213_v42, 0.0  ;;  %v2081_v1 = vand.u32 127, %v247_v63  ;;  %v2083_v2 = vshrl.u32 %v247_v63, 7 }
  0x2b   :  { %231 = vadd.xlane.f32.xlu1 %v230_v41  ;;  %v214_v50 = vmul.f32 %v173_v47, %v25_v46  ;;  %v201_v52 = vsel %vm182_vm2, %v180_v45, 0.0  ;;  %vm283_vm4 = vcmask 1042434   ;;  %vm285_vm5 = vcmask 1043459  }
  0x2c   :  { %199 = vadd.xlane.f32.xlu0 %v198_v44  ;;  %v99_v51 = vmul.f32 0.33333334, %v90_v48  ;;  %v2091_v5 = vsub.s32 %v2081_v1, %v2083_v2  ;;  %vm287_vm6 = vcmask 1044484   ;;  %vm289_vm7 = vcmask 1045509  }
  0x2d   :  { %v236_v54 = vsel %vm182_vm2, %v214_v50, 0.0  ;;  %vm291_vm8 = vcmask 1046534   ;;  %vm293_vm9 = vcmask 1047559   ;;  %vm296_vm10 = vcmask 64512  }
  0x2e   :  { %v181_v53 = vmul.f32 %v99_v51, %v25_v46  ;;  %v1931_v44 = vmov 0   ;;  %v2151_v45 = vsub.s32 0, %v2083_v2  ;;  %v2154_v46 = vsub.s32 1, %v2083_v2 }
  0x2f   :  { %234 = vadd.xlane.f32.xlu1 %v233_v49  ;;  %1843 = vset.pattern.permute.xlu0 %v1931_v44  ;;  %v2159_v48 = vsub.s32 4, %v2083_v2 }
  0x30   :  { %202 = vadd.xlane.f32.xlu0 %v201_v52  ;;  %v204_v55 = vsel %vm182_vm2, %v181_v53, 0.0  ;;  %1844 = vset.pattern.permute.xlu1 %v1931_v44  ;;  %v2166_v52 = vsub.s32 5, %v2083_v2 }
  0x33   :  { %237 = vadd.xlane.f32.xlu1 %v236_v54 }
  0x34   :  { %205 = vadd.xlane.f32.xlu0 %v204_v55 }
  0x9d   :  { %v2065_v56 = vpop.xlane.xlu1 %216 }
  0x9e   :  { %v2067_v57 = vpop.xlane.xlu0 %184  ;;  %v509_v7 = vrot.slane %v2065_v56, %v2091_v5 }
  0x9f   :  { %v252_v14 = vrot.slane %v2067_v57, %v2091_v5 }
  0xa1   :  { %v2069_v58 = vpop.xlane.xlu1 %219 }
  0xa2   :  { %v2071_v59 = vpop.xlane.xlu0 %187  ;;  %v513_v8 = vrot.slane %v2069_v58, %v2091_v5 }
  0xa3   :  { %v256_v10 = vrot.slane %v2071_v59, %v2091_v5 }
  0xa4   :  { %v538_v18 = vsel %vm281_vm3, %v513_v8, %v509_v7  ;;  %v2173_v7 = vsub.s32 2, %v2083_v2  ;;  %v2176_v8 = vsub.s32 6, %v2083_v2 }
  0xa5   :  { %v2073_v60 = vpop.xlane.xlu1 %222  ;;  %v282_v22 = vsel %vm281_vm3, %v256_v10, %v252_v14 }
  0xa6   :  { %v2075_v61 = vpop.xlane.xlu0 %190  ;;  %v517_v11 = vrot.slane %v2073_v60, %v2091_v5 }
  0xa7   :  { %v260_v12 = vrot.slane %v2075_v61, %v2091_v5 }
  0xa8   :  { %v539_v23 = vsel %vm283_vm4, %v517_v11, %v538_v18 }
  0xa9   :  { %v2077_v62 = vpop.xlane.xlu1 %225  ;;  %v284_v26 = vsel %vm283_vm4, %v260_v12, %v282_v22 }
  0xaa   :  { %v2079_v0 = vpop.xlane.xlu0 %193  ;;  %v521_v13 = vrot.slane %v2077_v62, %v2091_v5 }
  0xab   :  { %v264_v15 = vrot.slane %v2079_v0, %v2091_v5 }
  0xac   :  { %v540_v27 = vsel %vm285_vm5, %v521_v13, %v539_v23 }
  0xad   :  { %v286_v29 = vsel %vm285_vm5, %v264_v15, %v284_v26 }
  0xb0   :  { %v2085_v3 = vpop.xlane.xlu1 %228 }
  0xb1   :  { %v2087_v4 = vpop.xlane.xlu0 %196  ;;  %v525_v16 = vrot.slane %v2085_v3, %v2091_v5 }
  0xb2   :  { %v268_v19 = vrot.slane %v2087_v4, %v2091_v5 }
  0xb3   :  { %v541_v30 = vsel %vm287_vm6, %v525_v16, %v540_v27 }
  0xb4   :  { %v2093_v6 = vpop.xlane.xlu1 %231  ;;  %v288_v32 = vsel %vm287_vm6, %v268_v19, %v286_v29 }
  0xb5   :  { %v2099_v9 = vpop.xlane.xlu0 %199  ;;  %v529_v20 = vrot.slane %v2093_v6, %v2091_v5 }
  0xb6   :  { %v272_v24 = vrot.slane %v2099_v9, %v2091_v5 }
  0xb7   :  { %v542_v35 = vsel %vm289_vm7, %v529_v20, %v541_v30 }
  0xb8   :  { %v2115_v17 = vpop.xlane.xlu1 %234  ;;  %v290_v38 = vsel %vm289_vm7, %v272_v24, %v288_v32 }
  0xb9   :  { %v2122_v21 = vpop.xlane.xlu0 %202  ;;  %v533_v25 = vrot.slane %v2115_v17, %v2091_v5 }
  0xba   :  { %v276_v28 = vrot.slane %v2122_v21, %v2091_v5 }
  0xbb   :  { %v543_v37 = vsel %vm291_vm8, %v533_v25, %v542_v35 }
  0xbc   :  { %v238_v31 = vpop.xlane.xlu1 %237  ;;  %v292_v40 = vsel %vm291_vm8, %v276_v28, %v290_v38 }
  0xbd   :  { %v537_v33 = vrot.slane %v238_v31, %v2091_v5  ;;  %v2138_v34 = vpop.xlane.xlu0 %205 }
  0xbe   :  { %v280_v36 = vrot.slane %v2138_v34, %v2091_v5 }
  0xbf   :  { %v544_v39 = vsel %vm293_vm9, %v537_v33, %v543_v37 }
  0xc0   :  { %v546_v41 = vsel %vm296_vm10, %v544_v39, -inf  ;;  %v294_v42 = vsel %vm293_vm9, %v280_v36, %v292_v40 }
  0xc1   :  { %547 = vmax.xlane.f32.xlu1 %v546_v41  ;;  %v297_v43 = vsel %vm296_vm10, %v294_v42, -inf }
  0xc2   :  { %298 = vmax.xlane.f32.xlu0 %v297_v43 }
 0x14a   :  { %v548_v49 = vpop.xlane.xlu1 %547 }
 0x14b   :  { %v2156_v47 = vpop.xlane.xlu0 %298  ;;  %v569_v53 = vrot.slane %v548_v49, %v2159_v48  ;;  %v553_v54 = vrot.slane %v548_v49, %v2151_v45  ;;  %v573_v10 = vrot.slane %v548_v49, %v2166_v52  ;;  %v557_v12 = vrot.slane %v548_v49, %v2154_v46 }
 0x14c   :  { %v304_v50 = vrot.slane %v2156_v47, %v2151_v45  ;;  %v308_v51 = vrot.slane %v2156_v47, %v2154_v46  ;;  %v320_v37 = vrot.slane %v2156_v47, %v2159_v48  ;;  %v324_v41 = vrot.slane %v2156_v47, %v2166_v52 }
 0x14d   :  { %v594_v11 = vsub.f32 %v2085_v3, %v569_v53  ;;  %v590_v13 = vsub.f32 %v2065_v56, %v553_v54  ;;  %v595_v16 = vsub.f32 %v2093_v6, %v573_v10  ;;  %v591_v19 = vsub.f32 %v2069_v58, %v557_v12 }
 0x14e   :  { %v341_v55 = vsub.f32 %v2067_v57, %v304_v50  ;;  %v342_v63 = vsub.f32 %v2071_v59, %v308_v51  ;;  %v2183_v57 = vsub.s32 7, %v2083_v2  ;;  %v577_v59 = vrot.slane %v548_v49, %v2176_v8 }
 0x14f   :  { %v606_v18 = vmul.f32 1.442695, %v594_v11  ;;  %v598_v20 = vmul.f32 1.442695, %v590_v13  ;;  %v312_v3 = vrot.slane %v2156_v47, %v2173_v7  ;;  %v2191_v56 = vsub.s32 3, %v2083_v2 }
 0x150   :  { %v349_v14 = vmul.f32 1.442695, %v341_v55  ;;  %v351_v15 = vmul.f32 1.442695, %v342_v63  ;;  %v581_v22 = vrot.slane %v548_v49, %v2183_v57  ;;  %v596_v23 = vsub.f32 %v2115_v17, %v577_v59 }
 0x151   :  { %v608_v24 = vmul.f32 1.442695, %v595_v16  ;;  %v561_v6 = vrot.slane %v548_v49, %v2173_v7  ;;  %v600_v25 = vmul.f32 1.442695, %v591_v19  ;;  %v343_v58 = vsub.f32 %v2075_v61, %v312_v3 }
 0x152   :  { %1845 = vpow2.f32 %v349_v14  ;;  %v597_v26 = vsub.f32 %v238_v31, %v581_v22  ;;  %v610_v27 = vmul.f32 1.442695, %v596_v23  ;;  %v316_v29 = vrot.slane %v2156_v47, %v2191_v56 }
 0x153   :  { %1847 = vpow2.f32 %v351_v15  ;;  %v592_v28 = vsub.f32 %v2073_v60, %v561_v6  ;;  %v353_v30 = vmul.f32 1.442695, %v343_v58  ;;  %v565_v33 = vrot.slane %v548_v49, %v2191_v56 }
 0x154   :  { %1849 = vpow2.f32 %v606_v18  ;;  %v612_v17 = vmul.f32 1.442695, %v597_v26  ;;  %v344_v36 = vsub.f32 %v2079_v0, %v316_v29  ;;  %v345_v42 = vsub.f32 %v2087_v4, %v320_v37 }
 0x155   :  { %1851 = vpow2.f32 %v598_v20  ;;  %v602_v35 = vmul.f32 1.442695, %v592_v28  ;;  %v593_v31 = vsub.f32 %v2077_v62, %v565_v33  ;;  %v328_v44 = vrot.slane %v2156_v47, %v2176_v8 }
 0x156   :  { %1853 = vpow2.f32 %v608_v24  ;;  %v355_v38 = vmul.f32 1.442695, %v344_v36  ;;  %v346_v49 = vsub.f32 %v2099_v9, %v324_v41  ;;  %v357_v50 = vmul.f32 1.442695, %v345_v42 }
 0x157   :  { %1855 = vpow2.f32 %v600_v25  ;;  %v604_v40 = vmul.f32 1.442695, %v593_v31  ;;  %v332_v53 = vrot.slane %v2156_v47, %v2183_v57  ;;  %v347_v54 = vsub.f32 %v2122_v21, %v328_v44 }
 0x158   :  { %1857 = vpow2.f32 %v610_v27  ;;  %v359_v55 = vmul.f32 1.442695, %v346_v49 }
 0x159   :  { %1859 = vpow2.f32 %v353_v30  ;;  %v348_v9 = vsub.f32 %v2138_v34, %v332_v53  ;;  %v361_v10 = vmul.f32 1.442695, %v347_v54 }
 0x15a   :  { %1861 = vpow2.f32 %v612_v17 }
 0x15b   :  { %1863 = vpow2.f32 %v602_v35  ;;  %v363_v47 = vmul.f32 1.442695, %v348_v9 }
 0x15c   :  { %1865 = vpow2.f32 %v355_v38 }
 0x15d   :  { %1867 = vpow2.f32 %v604_v40 }
 0x15e   :  { %1869 = vpow2.f32 %v357_v50 }
 0x15f   :  { %v2200_v32 = vpop.eup %1845  ;;  %1871 = vpow2.f32 %v359_v55 }
 0x160   :  { %v2204_v61 = vpop.eup %1847  ;;  %374 = vperm.xlu0 %1843, %v2200_v32   ;;  %1873 = vpow2.f32 %v361_v10 }
 0x161   :  { %377 = vperm.xlu1 %1844, %v2204_v61   ;;  %v2208_v60 = vpop.eup %1849  ;;  %1875 = vpow2.f32 %v363_v47 }
 0x162   :  { %v2213_v39 = vpop.eup %1851 }
 0x163   :  { %v2217_v0 = vpop.eup %1853 }
 0x164   :  { %635 = vperm.xlu0 %1843, %v2208_v60   ;;  %v2222_v62 = vpop.eup %1855 }
 0x165   :  { %623 = vperm.xlu1 %1844, %v2213_v39   ;;  %v2226_v43 = vpop.eup %1857 }
 0x166   :  { %v2231_v51 = vpop.eup %1859 }
 0x167   :  { %v2235_v4 = vpop.eup %1861 }
 0x168   :  { %638 = vperm.xlu0 %1843, %v2217_v0   ;;  %v2240_v63 = vpop.eup %1863 }
 0x169   :  { %626 = vperm.xlu1 %1844, %v2222_v62   ;;  %v2245_v11 = vpop.eup %1865 }
 0x16a   :  { %v2248_v12 = vpop.eup %1867 }
 0x16b   :  { %v2251_v21 = vpop.eup %1869 }
 0x16c   :  { %641 = vperm.xlu0 %1843, %v2226_v43   ;;  %v2254_v13 = vpop.eup %1871 }
 0x16d   :  { %380 = vperm.xlu1 %1844, %v2231_v51   ;;  %v2257_v34 = vpop.eup %1873 }
 0x16e   :  { %v2260_v14 = vpop.eup %1875 }
 0x170   :  { %644 = vperm.xlu0 %1843, %v2235_v4  }
 0x171   :  { %629 = vperm.xlu1 %1844, %v2240_v63  }
 0x175   :  { %383 = vperm.xlu1 %1844, %v2245_v11  }
 0x179   :  { %632 = vperm.xlu1 %1844, %v2248_v12  }
 0x17d   :  { %386 = vperm.xlu1 %1844, %v2251_v21  }
 0x181   :  { %389 = vperm.xlu1 %1844, %v2254_v13  }
 0x185   :  { %392 = vperm.xlu1 %1844, %v2257_v34  }
 0x189   :  { %395 = vperm.xlu1 %1844, %v2260_v14  }
 0x1db   :  { %v375_v59 = vpop.permute.xlu0 %374 }
 0x1dc   :  { %v378_v15 = vpop.permute.xlu1 %377  ;;  %v400_v53 = vrot.slane %v375_v59, %v2091_v5 }
 0x1dd   :  { %v404_v50 = vrot.slane %v378_v15, %v2091_v5 }
 0x1df   :  { %v636_v18 = vpop.permute.xlu0 %635  ;;  %v429_v47 = vsel %vm281_vm3, %v404_v50, %v400_v53 }
 0x1e0   :  { %v624_v16 = vpop.permute.xlu1 %623  ;;  %v665_v29 = vrot.slane %v636_v18, %v2091_v5 }
 0x1e1   :  { %v649_v58 = vrot.slane %v624_v16, %v2091_v5 }
 0x1e3   :  { %v639_v3 = vpop.permute.xlu0 %638 }
 0x1e4   :  { %v627_v19 = vpop.permute.xlu1 %626  ;;  %v669_v33 = vrot.slane %v639_v3, %v2091_v5 }
 0x1e5   :  { %v653_v6 = vrot.slane %v627_v19, %v2091_v5 }
 0x1e7   :  { %v642_v23 = vpop.permute.xlu0 %641  ;;  %v678_v27 = vsel %vm281_vm3, %v653_v6, %v649_v58 }
 0x1e8   :  { %v381_v20 = vpop.permute.xlu1 %380  ;;  %v673_v36 = vrot.slane %v642_v23, %v2091_v5 }
 0x1e9   :  { %v408_v54 = vrot.slane %v381_v20, %v2091_v5 }
 0x1eb   :  { %v645_v17 = vpop.permute.xlu0 %644  ;;  %v430_v18 = vsel %vm283_vm4, %v408_v54, %v429_v47 }
 0x1ec   :  { %v630_v22 = vpop.permute.xlu1 %629  ;;  %v677_v38 = vrot.slane %v645_v17, %v2091_v5 }
 0x1ed   :  { %v657_v25 = vrot.slane %v630_v22, %v2091_v5 }
 0x1ef   :  { %v679_v30 = vsel %vm283_vm4, %v657_v25, %v678_v27 }
 0x1f0   :  { %v384_v24 = vpop.permute.xlu1 %383 }
 0x1f1   :  { %v412_v55 = vrot.slane %v384_v24, %v2091_v5 }
 0x1f3   :  { %v431_v15 = vsel %vm285_vm5, %v412_v55, %v430_v18 }
 0x1f4   :  { %v633_v26 = vpop.permute.xlu1 %632 }
 0x1f5   :  { %v661_v28 = vrot.slane %v633_v26, %v2091_v5 }
 0x1f7   :  { %v680_v35 = vsel %vm285_vm5, %v661_v28, %v679_v30 }
 0x1f8   :  { %v681_v31 = vsel %vm287_vm6, %v665_v29, %v680_v35  ;;  %v387_v37 = vpop.permute.xlu1 %386 }
 0x1f9   :  { %v682_v40 = vsel %vm289_vm7, %v669_v33, %v681_v31  ;;  %v416_v9 = vrot.slane %v387_v37, %v2091_v5 }
 0x1fa   :  { %v683_v41 = vsel %vm291_vm8, %v673_v36, %v682_v40 }
 0x1fb   :  { %v684_v42 = vsel %vm293_vm9, %v677_v38, %v683_v41  ;;  %v432_v59 = vsel %vm287_vm6, %v416_v9, %v431_v15 }
 0x1fc   :  { %v390_v44 = vpop.permute.xlu1 %389  ;;  %v686_v49 = vsel %vm296_vm10, %v684_v42, 0.0 }
 0x1fd   :  { %687 = vadd.xlane.f32.xlu0 %v686_v49  ;;  %v420_v16 = vrot.slane %v390_v44, %v2091_v5 }
 0x1ff   :  { %v433_v20 = vsel %vm289_vm7, %v420_v16, %v432_v59 }
 0x200   :  { %v393_v10 = vpop.permute.xlu1 %392 }
 0x201   :  { %v424_v19 = vrot.slane %v393_v10, %v2091_v5 }
 0x203   :  { %v434_v23 = vsel %vm291_vm8, %v424_v19, %v433_v20 }
 0x204   :  { %v396_v3 = vpop.permute.xlu1 %395 }
 0x205   :  { %v428_v22 = vrot.slane %v396_v3, %v2091_v5 }
 0x207   :  { %v435_v24 = vsel %vm293_vm9, %v428_v22, %v434_v23 }
 0x208   :  { %v437_v6 = vsel %vm296_vm10, %v435_v24, 0.0 }
 0x209   :  { %438 = vadd.xlane.f32.xlu1 %v437_v6  ;;  %v759_v6 = vmul.u32 40, %v2083_v2 }
 0x20b   :  { %vm760_vm14 = vcmp.ge.s32.totalorder %v2081_v1, %v759_v6 }
 0x286   :  { %v688_v25 = vpop.xlane.xlu0 %687 }
 0x287   :  { %v689_v58 = vadd.f32 %v688_v25, %v688_v25 }
 0x289   :  { %v698_v26 = vrot.slane %v689_v58, %v2154_v46  ;;  %v694_v27 = vrot.slane %v689_v58, %v2151_v45  ;;  %v702_v28 = vrot.slane %v689_v58, %v2173_v7  ;;  %v706_v30 = vrot.slane %v689_v58, %v2191_v56 }
 0x28a   :  { %v710_v40 = vrot.slane %v689_v58, %v2159_v48  ;;  %v722_v41 = vrot.slane %v689_v58, %v2183_v57 }
 0x28b   :  { %1877 = vrcp.f32 %v698_v26 }
 0x28c   :  { %1879 = vrcp.f32 %v694_v27  ;;  %v757_v27 = vadd.s32 128, %v2081_v1 }
 0x28d   :  { %1881 = vrcp.f32 %v702_v28 }
 0x28e   :  { %1883 = vrcp.f32 %v706_v30  ;;  %vm761_vm11 = vcmp.ge.s32.totalorder %v757_v27, %v759_v6 }
 0x292   :  { %v439_v29 = vpop.xlane.xlu1 %438 }
 0x293   :  { %v440_v17 = vadd.f32 %v439_v29, %v439_v29 }
 0x295   :  { %v449_v33 = vrot.slane %v440_v17, %v2154_v46  ;;  %v445_v35 = vrot.slane %v440_v17, %v2151_v45  ;;  %v453_v36 = vrot.slane %v440_v17, %v2173_v7  ;;  %v457_v31 = vrot.slane %v440_v17, %v2191_v56 }
 0x296   :  { %v461_v37 = vrot.slane %v440_v17, %v2159_v48  ;;  %v465_v38 = vrot.slane %v440_v17, %v2166_v52  ;;  %v714_v46 = vrot.slane %v689_v58, %v2166_v52  ;;  %v469_v45 = vrot.slane %v440_v17, %v2176_v8 }
 0x297   :  { %1885 = vrcp.f32 %v449_v33  ;;  %v473_v7 = vrot.slane %v440_v17, %v2183_v57  ;;  %v718_v56 = vrot.slane %v689_v58, %v2176_v8 }
 0x298   :  { %1887 = vrcp.f32 %v445_v35  ;;  %v1878_v42 = vpop.eup %1877 }
 0x299   :  { %1889 = vrcp.f32 %v453_v36  ;;  %v1880_v44 = vpop.eup %1879  ;;  %v734_v54 = vmul.f32 %v1878_v42, %v2222_v62 }
 0x29a   :  { %1891 = vrcp.f32 %v457_v31  ;;  %v1882_v48 = vpop.eup %1881  ;;  %v732_v9 = vmul.f32 %v1880_v44, %v2213_v39  ;;  %v1933_v31 = vmov 1.0  }
 0x29b   :  { %1893 = vrcp.f32 %v461_v37  ;;  %v1884_v52 = vpop.eup %1883  ;;  %v736_v59 = vmul.f32 %v1882_v48, %v2240_v63 }
 0x29c   :  { %1895 = vrcp.f32 %v465_v38  ;;  %v738_v62 = vmul.f32 %v1884_v52, %v2248_v12 }
 0x29d   :  { %1897 = vrcp.f32 %v710_v40 }
 0x29e   :  { %1899 = vrcp.f32 %v714_v46  ;;  %v758_v46 = vadd.s32 256, %v2081_v1 }
 0x29f   :  { %1901 = vrcp.f32 %v469_v45 }
 0x2a0   :  { %1903 = vrcp.f32 %v473_v7  ;;  %vm762_vm1 = vcmp.ge.s32.totalorder %v758_v46, %v759_v6 }
 0x2a1   :  { %1905 = vrcp.f32 %v718_v56 }
 0x2a2   :  { %1907 = vrcp.f32 %v722_v41 }
 0x2a4   :  { %v1886_v49 = vpop.eup %1885 }
 0x2a5   :  { %v1888_v50 = vpop.eup %1887  ;;  %v485_v53 = vmul.f32 %v1886_v49, %v2204_v61 }
 0x2a6   :  { %v1890_v55 = vpop.eup %1889  ;;  %v483_v8 = vmul.f32 %v1888_v50, %v2200_v32 }
 0x2a7   :  { %v1892_v57 = vpop.eup %1891  ;;  %v748_v10 = vadd.f32 %v734_v54, %v485_v53  ;;  %v487_v47 = vmul.f32 %v1890_v55, %v2231_v51 }
 0x2a8   :  { %v1894_v16 = vpop.eup %1893  ;;  %v747_v18 = vadd.f32 %v732_v9, %v483_v8  ;;  %v489_v19 = vmul.f32 %v1892_v57, %v2245_v11 }
 0x2a9   :  { %v1896_v15 = vpop.eup %1895  ;;  %788 = vperm.xlu1 %1844, %v748_v10   ;;  %v749_v32 = vadd.f32 %v736_v59, %v487_v47  ;;  %v491_v39 = vmul.f32 %v1894_v16, %v2251_v21 }
 0x2aa   :  { %v1898_v61 = vpop.eup %1897  ;;  %785 = vperm.xlu0 %1843, %v747_v18   ;;  %v750_v22 = vadd.f32 %v738_v62, %v489_v19  ;;  %v493_v51 = vmul.f32 %v1896_v15, %v2254_v13  ;;  %v763_v13 = vadd.s32 40, %v759_v6 }
 0x2ab   :  { %v1900_v3 = vpop.eup %1899  ;;  %v740_v11 = vmul.f32 %v1898_v61, %v2208_v60 }
 0x2ac   :  { %v1902_v20 = vpop.eup %1901  ;;  %v742_v63 = vmul.f32 %v1900_v3, %v2217_v0  ;;  %vm765_vm12 = vcmp.lt.s32.totalorder %v757_v27, %v763_v13  ;;  %vm764_vm15 = vcmp.lt.s32.totalorder %v2081_v1, %v763_v13  ;;  %vm766_vm2 = vcmp.lt.s32.totalorder %v758_v46, %v763_v13 }
 0x2ad   :  { %v1904_v23 = vpop.eup %1903  ;;  %791 = vperm.xlu1 %1844, %v749_v32   ;;  %v751_v12 = vadd.f32 %v740_v11, %v491_v39  ;;  %v495_v58 = vmul.f32 %v1902_v20, %v2257_v34  ;;  %vm2329_vm13 = vmand %vm761_vm11, %vm765_vm12 }
 0x2ae   :  { %v1906_v24 = vpop.eup %1905  ;;  %794 = vperm.xlu0 %1843, %v750_v22   ;;  %v752_v26 = vadd.f32 %v742_v63, %v493_v51  ;;  %v497_v21 = vmul.f32 %v1904_v23, %v2260_v14  ;;  %v1932_v14 = vmov 0.0   ;;  %vm2338_vm0 = vmand %vm760_vm14, %vm764_vm15  ;;  %1787 = vmatprep.subr.msk.mxu0 %vm2329_vm13, %v1933_v31 }
 0x2af   :  { %v1908_v25 = vpop.eup %1907  ;;  %v744_v28 = vmul.f32 %v1906_v24, %v2226_v43  ;;  %v1785_v43 = vsel %vm2329_vm13, 1.0, %v1932_v14  ;;  %1001 = vmatprep.mubr.f32.mxu1 %v1932_v14  ;;  %915 = vmatprep.mubr.f32.mxu0 %v1932_v14  ;;  %v1784_v30 = vsel %vm2338_vm0, 1.0, %v1932_v14  ;;  %vm2368_vm11 = vmand %vm762_vm1, %vm766_vm2 }
 0x2b0   :  { %v746_v60 = vmul.f32 %v1908_v25, %v2235_v4  ;;  %v2344_v4 = vsub.f32 %v1785_v43, %v1785_v43  ;;  %v2349_v17 = vsub.f32 %v1784_v30, %v1784_v30  ;;  %1788 = vmatpush1.msk.msra.mxu0 %vm2338_vm0, %v1933_v31  ;;  %v1786_v10 = vsel %vm2368_vm11, 1.0, %v1932_v14 }
 0x2b1   :  { %797 = vperm.xlu1 %1844, %v751_v12   ;;  %v753_v0 = vadd.f32 %v744_v28, %v495_v58  ;;  %v1422_v59 = vsub.f32 %v1786_v10, %v1786_v10 }
 0x2b2   :  { %800 = vperm.xlu0 %1843, %v752_v26   ;;  %v754_v34 = vadd.f32 %v746_v60, %v497_v21  ;;  %v959_v33 = vand.u32 4294901760, %v2344_v4  ;;  %v965_v35 = vand.u32 4294901760, %v2349_v17  ;;  %1041 = vmatprep.subr.mxu0 %v2344_v4 }
 0x2b3   :  { %v1423_v39 = vand.u32 4294901760, %v1422_v59 }
 0x2b4   :  { %v960_v36 = vsub.f32 %v2344_v4, %v959_v33  ;;  %v966_v37 = vsub.f32 %v2349_v17, %v965_v35 }
 0x2b5   :  { %803 = vperm.xlu1 %1844, %v753_v0  }
 0x2b6   :  { %806 = vperm.xlu0 %1843, %v754_v34   ;;  %v961_v38 = vand.u32 4294901760, %v960_v36  ;;  %v967_v40 = vand.u32 4294901760, %v966_v37 }
 0x2b8   :  { %962 = vmatprep.subr.mxu1 %v961_v38  ;;  %v1761_v38 = vld [vmem:[%s2449_s3 + $0x8] sm:$0xff] }
 0x2b9   :  { %968 = vmatpush1.msra.mxu1 %v967_v40 }
 0x2ba   :  { %1789 = vmatprep.subr.msk.mxu1 %vm2329_vm13, %v1933_v31 }
 0x324   :  { %v789_v7 = vpop.permute.xlu1 %788 }
 0x325   :  { %v786_v56 = vpop.permute.xlu0 %785  ;;  %v815_v41 = vrot.slane %v789_v7, %v2091_v5 }
 0x326   :  { %v811_v42 = vrot.slane %v786_v56, %v2091_v5 }
 0x328   :  { %v792_v44 = vpop.permute.xlu1 %791  ;;  %v840_v52 = vsel %vm281_vm3, %v815_v41, %v811_v42  ;;  %vm1934_vm3 = vmmov 0  }
 0x329   :  { %v819_v1 = vrot.slane %v792_v44, %v2091_v5  ;;  %v795_v48 = vpop.permute.xlu0 %794 }
 0x32a   :  { %v823_v49 = vrot.slane %v795_v48, %v2091_v5 }
 0x32b   :  { %v841_v50 = vsel %vm283_vm4, %v819_v1, %v840_v52  ;;  %vm1768_vm4 = vcmask 523264  }
 0x32c   :  { %v798_v53 = vpop.permute.xlu1 %797  ;;  %v842_v8 = vsel %vm285_vm5, %v823_v49, %v841_v50 }
 0x32d   :  { %v827_v54 = vrot.slane %v798_v53, %v2091_v5  ;;  %v801_v55 = vpop.permute.xlu0 %800 }
 0x32e   :  { %v831_v9 = vrot.slane %v801_v55, %v2091_v5 }
 0x32f   :  { %v843_v57 = vsel %vm287_vm6, %v827_v54, %v842_v8  ;;  %v1762_v54 = vld [vmem:[%s2449_s3 + $0x10] sm:$0xff] }
 0x330   :  { %v804_v47 = vpop.permute.xlu1 %803  ;;  %v844_v19 = vsel %vm289_vm7, %v831_v9, %v843_v57 }
 0x331   :  { %v835_v16 = vrot.slane %v804_v47, %v2091_v5  ;;  %v807_v18 = vpop.permute.xlu0 %806 }
 0x332   :  { %v839_v15 = vrot.slane %v807_v18, %v2091_v5  ;;  %v1424_v5 = vsub.f32 %v1422_v59, %v1423_v39 }
 0x333   :  { %v845_v61 = vsel %vm291_vm8, %v835_v16, %v844_v19 }
 0x334   :  { %v846_v62 = vsel %vm293_vm9, %v839_v15, %v845_v61  ;;  %v1425_v11 = vand.u32 4294901760, %v1424_v5 }
 0x335   :  { %v847_v3 = vsel %vm296_vm10, %v846_v62, 0 }
 0x336   :  { %v916_v32 = vand.u32 4294901760, %v847_v3 }
 0x338   :  { %v917_v20 = vsub.f32 %v847_v3, %v916_v32  ;;  %1003 = vmatmul.mubr.f32.vlgmr.msra.gmra.mxu1 %v916_v32 }
 0x339   :  { %1790 = vmatpush1.msk.msra.mxu1 %vm2338_vm0, %v1933_v31  ;;  %1152 = vmatprep.mubr.f32.mxu1 %v1932_v14 }
 0x33a   :  { %v918_v22 = vand.u32 4294901760, %v917_v20  ;;  %1791 = vmatprep.subr.msk.mxu1 %vm2329_vm13, %v1933_v31 }
 0x33c   :  { %1156 = vmatmul.mubr.f32.vlgmr.msra.gmra.mxu1 %v918_v22  ;;  %v919_v51 = vsub.f32 %v917_v20, %v918_v22 }
 0x33d   :  { %1792 = vmatpush1.msk.msra.mxu1 %vm2338_vm0, %v1933_v31  ;;  %1306 = vmatprep.mubr.f32.mxu1 %v1932_v14 }
 0x33e   :  { %v920_v23 = vand.u32 4294901760, %v919_v51  ;;  %1813 = vmatprep.subr.mxu1 %v1932_v14 }
 0x340   :  { %921 = vmatmul.mubr.f32.vlgmr.msra.gmra.mxu0 %v920_v23  ;;  %1308 = vmatmul.mubr.f32.vlgmr.msra.gmra.mxu1 %v916_v32 }
 0x341   :  { %1044 = vmatpush1.msra.mxu0 %v2349_v17  ;;  %1077 = vmatprep.mubr.f32.mxu0 %v1932_v14 }
 0x342   :  { %1195 = vmatprep.subr.mxu0 %v959_v33  ;;  %1814 = vmatpush3.msra.mxu1 %v1425_v11  ;;  %v1760_v33 = vld [vmem:[%s2449_s3] sm:$0xff] }
 0x343   :  { %1815 = vmatprep.mubr.msk.f32.mxu1 %vm1934_vm3, %v1932_v14  ;;  %1823 = vmatprep.subr.mxu1 %v1932_v14 }
 0x344   :  { %1080 = vmatmul.mubr.f32.vlgmr.msra.gmra.mxu0 %v917_v20  ;;  %1816 = vmatmul.mubr.f32.vlgmr.msra.gmra.mxu1 %v916_v32 }
 0x345   :  { %1199 = vmatpush1.msra.mxu0 %v965_v35  ;;  %1232 = vmatprep.mubr.f32.mxu0 %v1932_v14 }
 0x346   :  { %1808 = vmatprep.subr.mxu0 %v1932_v14  ;;  %1824 = vmatpush3.msk.msra.mxu1 %vm2368_vm11, %v1933_v31 }
 0x347   :  { %1825 = vmatprep.mubr.msk.f32.mxu1 %vm1934_vm3, %v1932_v14  ;;  %1833 = vmatprep.subr.mxu1 %v1932_v14 }
 0x348   :  { %1234 = vmatmul.mubr.f32.vlgmr.msra.gmra.mxu0 %v916_v32  ;;  %1826 = vmatmul.mubr.f32.vlgmr.msra.gmra.mxu1 %v918_v22 }
 0x349   :  { %1809 = vmatpush3.msk.msra.mxu0 %vm2368_vm11, %v1933_v31  ;;  %1810 = vmatprep.mubr.msk.f32.mxu0 %vm1934_vm3, %v1932_v14 }
 0x34a   :  { %1818 = vmatprep.subr.mxu0 %v1932_v14  ;;  %1834 = vmatpush3.msk.msra.mxu1 %vm2368_vm11, %v1933_v31 }
 0x34b   :  { %1835 = vmatprep.mubr.msk.f32.mxu1 %vm1934_vm3, %v1932_v14 }
 0x34c   :  { %1811 = vmatmul.mubr.f32.vlgmr.msra.gmra.mxu0 %v920_v23  ;;  %1836 = vmatmul.mubr.f32.vlgmr.msra.gmra.mxu1 %v916_v32 }
 0x34d   :  { %1819 = vmatpush3.msra.mxu0 %v1422_v59  ;;  %1820 = vmatprep.mubr.msk.f32.mxu0 %vm1934_vm3, %v1932_v14 }
 0x34e   :  { %1828 = vmatprep.subr.mxu0 %v1932_v14 }
 0x350   :  { %1821 = vmatmul.mubr.f32.vlgmr.msra.gmra.mxu0 %v917_v20 }
 0x351   :  { %1829 = vmatpush3.msra.mxu0 %v1423_v39  ;;  %1830 = vmatprep.mubr.msk.f32.mxu0 %vm1934_vm3, %v1932_v14 }
 0x354   :  { %1831 = vmatmul.mubr.f32.vlgmr.msra.gmra.mxu0 %v916_v32 }
 0x3f8   :  { %v1004_v24 = vpop.f32.mrf.mxu1 }
 0x3fa   :  { %v1006_v63 = vpop.f32.mrf.mxu1 }
 0x3fc   :  { %v1157_v6 = vpop.f32.mrf.mxu1 }
 0x3fe   :  { %v1159_v25 = vpop.f32.mrf.mxu1 }
 0x400   :  { %v922_v12 = vpop.f32.mrf.mxu0  ;;  %v1309_v58 = vpop.f32.mrf.mxu1 }
 0x401   :  { %v1005_v27 = vadd.f32 %v1004_v24, %v922_v12 }
 0x402   :  { %v924_v26 = vpop.f32.mrf.mxu0  ;;  %v1311_v21 = vpop.f32.mrf.mxu1 }
 0x403   :  { %v1007_v60 = vadd.f32 %v1006_v63, %v924_v26 }
 0x404   :  { %v1081_v13 = vpop.f32.mrf.mxu0  ;;  %v1462_v28 = vpop.f32.mrf.mxu1 }
 0x405   :  { %v1082_v0 = vadd.f32 %v1081_v13, %v1005_v27 }
 0x406   :  { %v1083_v2 = vpop.f32.mrf.mxu0  ;;  %v1817_v34 = vpop.f32.mrf.mxu1 }
 0x407   :  { %v1084_v43 = vadd.f32 %v1083_v2, %v1007_v60  ;;  %v1158_v29 = vadd.f32 %v1157_v6, %v1082_v0 }
 0x408   :  { %v1235_v4 = vpop.f32.mrf.mxu0  ;;  %v1610_v14 = vpop.f32.mrf.mxu1 }
 0x409   :  { %v1236_v30 = vadd.f32 %v1235_v4, %v1158_v29  ;;  %v1160_v17 = vadd.f32 %v1159_v25, %v1084_v43 }
 0x40a   :  { %v1237_v35 = vpop.f32.mrf.mxu0  ;;  %v1827_v36 = vpop.f32.mrf.mxu1 }
 0x40b   :  { %v1310_v31 = vadd.f32 %v1309_v58, %v1236_v30  ;;  %v1238_v37 = vadd.f32 %v1237_v35, %v1160_v17 }
 0x40c   :  { %v1386_v40 = vpop.f32.mrf.mxu0  ;;  %v1756_v46 = vpop.f32.mrf.mxu1 }
 0x40d   :  { %v1763_v45 = vmul.f32 %v1760_v33, %v1310_v31  ;;  %v1312_v7 = vadd.f32 %v1311_v21, %v1238_v37  ;;  %v1463_v44 = vadd.f32 %v1462_v28, %v1386_v40 }
 0x40e   :  { %v1812_v56 = vpop.f32.mrf.mxu0  ;;  %v1837_v41 = vpop.f32.mrf.mxu1 }
 0x40f   :  { %1766 = vst [vmem:[#allocation2] sm:$0xff] %v1763_v45  ;;  %v1764_v42 = vmul.f32 %v1761_v38, %v1312_v7 }
 0x410   :  { %v1536_v1 = vpop.f32.mrf.mxu0 }
 0x411   :  { %1767 = vst [vmem:[#allocation2 + $0x8] sm:$0xff] %v1764_v42  ;;  %v1537_v48 = vadd.f32 %v1536_v1, %v1463_v44 }
 0x412   :  { %v1822_v52 = vpop.f32.mrf.mxu0 }
 0x413   :  { %v1611_v49 = vadd.f32 %v1610_v14, %v1537_v48 }
 0x414   :  { %v1684_v50 = vpop.f32.mrf.mxu0 }
 0x415   :  { %v1685_v53 = vadd.f32 %v1684_v50, %v1611_v49 }
 0x416   :  { %v1832_v55 = vpop.f32.mrf.mxu0 }
 0x417   :  { %v1757_v8 = vadd.f32 %v1756_v46, %v1685_v53 }
 0x419   :  { %v1765_v9 = vmul.f32 %v1762_v54, %v1757_v8 }
 0x41b   :  { %1769 = vst.msk [vmem:[#allocation2 + $0x10] sm:$0xff] %vm1768_vm4, %v1765_v9 }
 0x41c   :  { %1920 = shalt.err (!%p1917_p4)
}
 0x41d   :  { %1779 = dma.vmem_to_hbm [thread:$0]  %s1777_s15, 384, %s2450_s4, [#allocation3]  }
 0x41e   :  { %1929 = dma.done.wait [#allocation3], 384  }
 0x41f   :  { %1930 = vsyncadd [#allocation3], 4294966912 }
 0x420   :  { %1783 = vsyncpa [#allocation3], 1 }

</bundles_post_ra>
